<compile_context>
chip_gen: v6e
topology: v6e:2x2x1
jax: 0.10.0
libtpu: 0.0.40
codegen_flags: <defaults>
</compile_context>

<pallas_src>
import jax
import jax.numpy as jnp
from jax.experimental import pallas as pl
from jax.experimental.pallas import tpu as pltpu


def _detection_head_kernel(x_ref, w_ref, b_ref, o_ref):
    # x_ref: (nb, Cin, T)   w_ref: (Cout, Cin)   b_ref: (Cout, 1)   o_ref: (nb, Cout, T)
    w = w_ref[...]
    b = b_ref[...]
    # nb is a small static block-batch: 1 in the per-image grid, N (tiny) when the
    # batch is folded on single-TC parts.  Static unroll keeps everything on the MXU.
    for n in range(x_ref.shape[0]):
        acc = jnp.dot(w, x_ref[n], preferred_element_type=jnp.float32)
        o_ref[n] = (acc + b).astype(o_ref.dtype)


_SINGLE_TC_KINDS = ("v5e", "v5 lite", "v5litepod", "v6e", "v6 lite", "v6litepod")


def _is_single_tensorcore_chip():
    """Best-effort detection of 1-TC chips (v5e/v6e). Defaults to False (safe)."""
    try:
        kind = jax.devices()[0].device_kind.lower()
    except Exception:
        return False
    return any(k in kind for k in _SINGLE_TC_KINDS)


def _round_up(v, m):
    return ((v + m - 1) // m) * m


def detection_head_forward(x_nchw, weight, bias, *, vmem_budget_bytes=24 * 1024 * 1024):
    """1x1 conv forward (DetectionHead.forward).

    x_nchw : (N, Cin, H, W) float32
    weight : (Cout, Cin) or (Cout, Cin, 1, 1) float32
    bias   : (Cout,) float32
    returns: (N, Cout, H, W) float32

    vmem_budget_bytes: cap on pipeline-buffer VMEM (default 24 MiB — safe on v7x's
    64 MiB VMEM and still big enough to keep H*W up to ~11K in a single tile).
    """
    N, Cin, H, W = x_nchw.shape
    weight = weight.reshape(weight.shape[0], -1)          # accept (Cout,Cin,1,1) too
    Cout = weight.shape[0]
    HW = H * W
    dtype = x_nchw.dtype
    itemsize = jnp.dtype(dtype).itemsize

    # Pure view — no transpose, no data movement.
    x3d = x_nchw.reshape(N, Cin, HW)
    b2d = bias.reshape(Cout, 1)

    # ---- VMEM budgeting (accounts for sublane/lane padding of VMEM tiles). ----
    cin_pad = _round_up(Cin, 8)
    cout_pad = _round_up(Cout, 8)
    # Weight + bias are constant-index blocks; budget them double-buffered and
    # lane-padded (worst case ~0.5 MiB total).
    resident_bytes = 2 * 2 * (cout_pad * 128 * itemsize)
    # Double-buffered input + output bytes per H*W column.
    col_bytes = 2 * (cin_pad + cout_pad) * itemsize
    avail = vmem_budget_bytes - resident_bytes - (1 << 20)
    hw_cap = max(128, (avail // col_bytes) // 128 * 128)   # ~11K for the default budget

    if HW <= hw_cap:
        # One spatial tile per image: contiguous output slab per step, no padding
        # needed even for non-128-aligned H*W (block dim == full array dim).
        hw_tile = HW
        HW_pad = HW
    else:
        # Very large feature maps only: fall back to lane-dense tiling of H*W.
        hw_tile = hw_cap
        HW_pad = _round_up(HW, hw_tile)
        if HW_pad != HW:
            # TODO(synk): handle the ragged tail in-kernel (masked store) to avoid the
            # post-slice output copy; only reachable for H*W > ~11K with ragged size.
            x3d = jnp.pad(x3d, ((0, 0), (0, 0), (0, HW_pad - HW)))

    num_hw = HW_pad // hw_tile

    # ---- Grid selection: fold the batch on single-TC parts when it fits VMEM. ----
    fold_fits = (
        2 * N * (cin_pad + cout_pad) * hw_tile * itemsize + resident_bytes + (1 << 20)
        <= vmem_budget_bytes
    )
    fold_batch = _is_single_tensorcore_chip() and num_hw == 1 and fold_fits

    if fold_batch:
        # v5e/v6e small-feature-map path: one fat grid step, fewer per-step overheads.
        nb = N
        grid = (num_hw,)
        x_spec = pl.BlockSpec((N, Cin, hw_tile), lambda h: (0, 0, h))
        w_spec = pl.BlockSpec((Cout, Cin), lambda h: (0, 0))
        b_spec = pl.BlockSpec((Cout, 1), lambda h: (0, 0))
        o_spec = pl.BlockSpec((N, Cout, hw_tile), lambda h: (0, 0, h))
        semantics = ("arbitrary",)
    else:
        # v7x (and large maps): >= N independent parallel steps for both TensorCores.
        nb = 1
        grid = (N, num_hw)
        x_spec = pl.BlockSpec((1, Cin, hw_tile), lambda n, h: (n, 0, h))
        w_spec = pl.BlockSpec((Cout, Cin), lambda n, h: (0, 0))
        b_spec = pl.BlockSpec((Cout, 1), lambda n, h: (0, 0))
        o_spec = pl.BlockSpec((1, Cout, hw_tile), lambda n, h: (n, 0, h))
        semantics = ("parallel", "parallel")

    # Explicit scoped-VMEM limit: 2*(x tile + out tile) + resident weight/bias + margin.
    needed = (
        2 * nb * (cin_pad + cout_pad) * hw_tile * itemsize + resident_bytes + (2 << 20)
    )
    vmem_limit = int(min(max(needed, 32 * 1024 * 1024), 56 * 1024 * 1024))

    cost = pl.CostEstimate(
        flops=2 * N * Cout * Cin * HW,
        transcendentals=0,
        bytes_accessed=(N * Cin * HW + N * Cout * HW + Cout * Cin + Cout) * itemsize,
    )

    out3d = pl.pallas_call(
        _detection_head_kernel,
        out_shape=jax.ShapeDtypeStruct((N, Cout, HW_pad), dtype),
        grid=grid,
        in_specs=[x_spec, w_spec, b_spec],
        out_specs=o_spec,
        compiler_params=pltpu.CompilerParams(
            dimension_semantics=semantics,
            vmem_limit_bytes=vmem_limit,
        ),
        cost_estimate=cost,
    )(x3d, weight, b2d)

    if HW_pad != HW:
        out3d = out3d[:, :, :HW]
    return out3d.reshape(N, Cout, H, W)


if __name__ == "__main__":
    # Module config (matches DetectionHead defaults): 80 classes, 3 anchors.
    num_classes = 80
    num_anchors = 3
    in_channels = 4
    out_channels = num_anchors * (num_classes + 5)   # 255

    key = jax.random.PRNGKey(0)
    kx, kw, kb = jax.random.split(key, 3)
    N, H, W = 2, 16, 16
    x = jax.random.normal(kx, (N, in_channels, H, W), dtype=jnp.float32)
    weight = jax.random.normal(kw, (out_channels, in_channels), dtype=jnp.float32) * 0.1
    bias = jax.random.normal(kb, (out_channels,), dtype=jnp.float32) * 0.1

    out = detection_head_forward(x, weight, bias)
    out = jax.block_until_ready(out)

    # Pure-JAX reference (1x1 conv == channel matmul).
    ref = jnp.einsum("nchw,oc->nohw", x, weight) + bias[None, :, None, None]
    assert out.shape == (N, out_channels, H, W)
    assert jnp.allclose(out, ref, atol=1e-4, rtol=1e-4)

    print("KERNEL_OK")
</pallas_src>

<mosaic_0001>
module attributes {stable_mosaic.version = 11 : i64} {
  func.func @_detection_head_kernel(%arg0: i32, %arg1: i32, %arg2: memref<1x4x256xf32, #tpu.memory_space<vmem>>, %arg3: memref<255x4xf32, #tpu.memory_space<vmem>>, %arg4: memref<255x1xf32, #tpu.memory_space<vmem>>, %arg5: memref<1x255x256xf32, #tpu.memory_space<vmem>>) attributes {dimension_semantics = [#tpu.dimension_semantics<parallel>, #tpu.dimension_semantics<parallel>], iteration_bounds = array<i64: 2, 1>, scalar_prefetch = 0 : i64, scratch_operands = 0 : i64, tpu.core_type = #tpu.core_type<tc>, window_params = [{transform_indices = @transform_0, window_bounds = array<i64: 1, 4, 256>}, {pipeline_mode = #tpu.pipeline_mode<synchronous>, transform_indices = @transform_1, window_bounds = array<i64: 255, 4>}, {pipeline_mode = #tpu.pipeline_mode<synchronous>, transform_indices = @transform_2, window_bounds = array<i64: 255, 1>}, {transform_indices = @transform_3, window_bounds = array<i64: 1, 255, 256>}]} {
    %c0 = arith.constant 0 : index
    %c0_0 = arith.constant 0 : index
    %0 = vector.load %arg3[%c0, %c0_0] : memref<255x4xf32, #tpu.memory_space<vmem>>, vector<255x4xf32>
    %c0_1 = arith.constant 0 : index
    %c0_2 = arith.constant 0 : index
    %1 = vector.load %arg4[%c0_1, %c0_2] : memref<255x1xf32, #tpu.memory_space<vmem>>, vector<255x1xf32>
    %c0_3 = arith.constant 0 : index
    %c0_4 = arith.constant 0 : index
    %c0_5 = arith.constant 0 : index
    %2 = vector.load %arg2[%c0_3, %c0_4, %c0_5] : memref<1x4x256xf32, #tpu.memory_space<vmem>>, vector<1x4x256xf32>
    %3 = vector.shape_cast %2 : vector<1x4x256xf32> to vector<4x256xf32>
    %cst = arith.constant dense<0.000000e+00> : vector<255x256xf32>
    %4 = tpu.matmul %0, %3, %cst {dimension_numbers = #tpu.dot_dimension_numbers<[1], [0], [0], [1], [0, 0, 1, 1], [], []>} : vector<255x4xf32>, vector<4x256xf32>, vector<255x256xf32> -> vector<255x256xf32>
    %5 = vector.broadcast %1 : vector<255x1xf32> to vector<255x256xf32>
    %6 = arith.addf %4, %5 : vector<255x256xf32>
    %c0_6 = arith.constant 0 : index
    %c0_7 = arith.constant 0 : index
    %c0_8 = arith.constant 0 : index
    %7 = vector.load %arg5[%c0_6, %c0_7, %c0_8] : memref<1x255x256xf32, #tpu.memory_space<vmem>>, vector<1x255x256xf32>
    %8 = vector.shape_cast %7 : vector<1x255x256xf32> to vector<255x256xf32>
    %9 = vector.shape_cast %6 : vector<255x256xf32> to vector<1x255x256xf32>
    tpu.vector_store %arg5[%c0_6, %c0_7, %c0_8], %9 {strides = array<i32>} : memref<1x255x256xf32, #tpu.memory_space<vmem>>, vector<1x255x256xf32>,
    return
  }
  func.func @transform_0(%arg0: i32, %arg1: i32) -> (i32, i32, i32) {
    %c0_i32 = arith.constant 0 : i32
    %c0_i32_0 = arith.constant 0 : i32
    return %arg0, %c0_i32, %arg1 : i32, i32, i32
  }
  func.func @transform_1(%arg0: i32, %arg1: i32) -> (i32, i32) {
    %c0_i32 = arith.constant 0 : i32
    %c0_i32_0 = arith.constant 0 : i32
    %c0_i32_1 = arith.constant 0 : i32
    return %c0_i32, %c0_i32_0 : i32, i32
  }
  func.func @transform_2(%arg0: i32, %arg1: i32) -> (i32, i32) {
    %c0_i32 = arith.constant 0 : i32
    %c0_i32_0 = arith.constant 0 : i32
    %c0_i32_1 = arith.constant 0 : i32
    return %c0_i32, %c0_i32_0 : i32, i32
  }
  func.func @transform_3(%arg0: i32, %arg1: i32) -> (i32, i32, i32) {
    %c0_i32 = arith.constant 0 : i32
    %c0_i32_0 = arith.constant 0 : i32
    return %arg0, %c0_i32, %arg1 : i32, i32, i32
  }
}

</mosaic_0001>

<bundles_post_ra>
// kernel: tpu_custom_call.1
= control target key start
LH: loop header
LB: loop body
LE: loop exit
PB: predicated region body
PF: predicated region fallthrough
CT: control target
= control target key end

     0   :  { %s1071_s12 = smov 0   ;;  %s1073_s13 = smov 0   ;;  %s1482_s0 = inlined_call_operand.vmem [shape: f32[2,4,256], index: 0, kind: input, shape index: {}]   ;;  %s1483_s1 = inlined_call_operand.vmem [shape: f32[255,4], index: 1, kind: input, shape index: {}]   ;;  %s1484_s2 = inlined_call_operand.vmem [shape: f32[255,1], index: 2, kind: input, shape index: {}]   ;;  %s1485_s3 = inlined_call_operand.vmem [shape: f32[2,255,256], index: 3, kind: output, shape index: {}]  }
   0x1   :  { %s1075_s14 = smov 0  }
   0x2 LB: > { %s25_s15 = sadd.s32 1, %s1043_s13  ;;  %p951_p0 = scmp.ge.s32.totalorder %s1047_s14, 1  ;;  %s1047_s14 = sphi %s1075_s14, %s13_s14   ;;  %s1043_s13 = sphi %s1073_s13, %s1487_s13   ;;  %s1039_s12 = sphi %s1071_s12, %s1486_s12  }
   0x3   : > { %p27_p1 = scmp.ge.s32.totalorder %s25_s15, 2  ;;  %p158_p2 = scmp.lt.s32.totalorder %s1047_s14, 3 }
   0x5   : > { %s1489_s15 = smov (%p27_p1, %s25_s15), 0  ;;  %p159_p3 = pnand %p951_p0, %p158_p2 }
   0x6   : > { %p191_p4 = scmp.lt.s32.totalorder (!%p159_p3), %s1039_s12, 1 }
   0x7   : > { %162 = sbr.rel (%p159_p3) target bundleno = 279 (0x117), region = 32 }
   0xc   : > { %v1049_v0 = vmov 0.0   ;;  %s1491_s12 = smov (!%p191_p4, %s1039_s12), 1  ;;  %v1050_v1 = vmov 0   ;;  %v244_v2 = vld [vmem:[%s1484_s2 + $0x10] sm:$0xff]  ;;  %v242_v3 = vld [vmem:[%s1484_s2] sm:$0xff]  ;;  %v245_v4 = vld [vmem:[%s1484_s2 + $0x18] sm:$0xff] }
   0xd   : > { %603 = vmatprep.mubr.f32.mxu0 %v1049_v0  ;;  %699 = vmatprep.mubr.f32.mxu1 %v1049_v0  ;;  %s992_s20 = sshll.u32 %s1491_s12, 3  ;;  %v243_v5 = vld [vmem:[%s1484_s2 + $0x8] sm:$0xff]  ;;  %vm534_vm0 = vcmask 1043456   ;;  %v210_v8 = vld [vmem:[%s1483_s1] sm:$0xff]  ;;  %vm437_vm1 = vcmask 31744   ;;  %v249_v14 = vld [vmem:[%s1484_s2 + $0x38] sm:$0xff] }
   0xe   : > { %1023 = vset.pattern.permute.xlu1 %v1050_v1  ;;  %1022 = vset.pattern.permute.xlu0 %v1050_v1  ;;  %s198_s27 = scalar_lea.vmem %s1482_s0, %s992_s20  ;;  %v226_v9 = vld [vmem:[%s1483_s1 + $0x80] sm:$0xff]  ;;  %v247_v10 = vld [vmem:[%s1484_s2 + $0x28] sm:$0xff]  ;;  %v248_v15 = vld [vmem:[%s1484_s2 + $0x30] sm:$0xff]  ;;  %s993_s6 = sshll.u32 %s1491_s12, 9 }
   0xf   : > { %287 = vperm.xlu1 %1023, %v244_v2   ;;  %277 = vperm.xlu0 %1022, %v242_v3   ;;  %v274_v6 = vld [vmem:[%s198_s27] sm:$0xff]  ;;  %v211_v12 = vld [vmem:[%s1483_s1 + $0x8] sm:$0xff]  ;;  %v212_v16 = vld [vmem:[%s1483_s1 + $0x10] sm:$0xff]  ;;  %s1381_s9 = scalar_lea.vmem %s1485_s3, %s993_s6 }
  0x10   : > { %v436_v7 = vcombine.high %v274_v6, %v274_v6  ;;  %v246_v11 = vld [vmem:[%s1484_s2 + $0x20] sm:$0xff]  ;;  %v227_v13 = vld [vmem:[%s1483_s1 + $0x88] sm:$0xff]  ;;  %v228_v17 = vld [vmem:[%s1483_s1 + $0x90] sm:$0xff] }
  0x11   : > { %v251_v18 = vld [vmem:[%s1484_s2 + $0x48] sm:$0xff]  ;;  %v250_v19 = vld [vmem:[%s1484_s2 + $0x40] sm:$0xff]  ;;  %v213_v20 = vld [vmem:[%s1483_s1 + $0x18] sm:$0xff] }
  0x12   : > { %956 = vmatprep.subr.msk.mxu0 %vm534_vm0, %v436_v7  ;;  %994 = vmatprep.subr.msk.mxu1 %vm534_vm0, %v436_v7  ;;  %v229_v21 = vld [vmem:[%s1483_s1 + $0x98] sm:$0xff]  ;;  %v252_v23 = vld [vmem:[%s1484_s2 + $0x50] sm:$0xff]  ;;  %v214_v24 = vld [vmem:[%s1483_s1 + $0x20] sm:$0xff] }
  0x13   : > { %292 = vperm.xlu1 %1023, %v245_v4   ;;  %282 = vperm.xlu0 %1022, %v243_v5   ;;  %v253_v22 = vld [vmem:[%s1484_s2 + $0x58] sm:$0xff]  ;;  %v230_v25 = vld [vmem:[%s1483_s1 + $0xa0] sm:$0xff]  ;;  %v255_v26 = vld [vmem:[%s1484_s2 + $0x68] sm:$0xff] }
  0x14   : > { %957 = vmatpush1.msk.msra.mxu0 %vm534_vm0, %v274_v6  ;;  %995 = vmatpush1.msk.msra.mxu1 %vm534_vm0, %v274_v6  ;;  %v254_v27 = vld [vmem:[%s1484_s2 + $0x60] sm:$0xff]  ;;  %v215_v28 = vld [vmem:[%s1483_s1 + $0x28] sm:$0xff]  ;;  %v257_v30 = vld [vmem:[%s1484_s2 + $0x78] sm:$0xff] }
  0x15   : > { %958 = vmatmul.mubr.msk.f32.vlgmr.msra.gmra.mxu0 %vm437_vm1, %v210_v8  ;;  %974 = vmatmul.mubr.msk.f32.vlgmr.msra.gmra.mxu1 %vm437_vm1, %v226_v9  ;;  %v231_v29 = vld [vmem:[%s1483_s1 + $0xa8] sm:$0xff]  ;;  %v256_v31 = vld [vmem:[%s1484_s2 + $0x70] sm:$0xff]  ;;  %v258_v35 = vld [vmem:[%s1484_s2 + $0x80] sm:$0xff] }
  0x16   : > { %609 = vmatprep.mubr.f32.mxu0 %v1049_v0  ;;  %705 = vmatprep.mubr.f32.mxu1 %v1049_v0  ;;  %v216_v32 = vld [vmem:[%s1483_s1 + $0x30] sm:$0xff]  ;;  %v259_v34 = vld [vmem:[%s1484_s2 + $0x88] sm:$0xff]  ;;  %v217_v36 = vld [vmem:[%s1483_s1 + $0x38] sm:$0xff] }
  0x17   : > { %302 = vperm.xlu1 %1023, %v247_v10   ;;  %297 = vperm.xlu0 %1022, %v246_v11   ;;  %v232_v33 = vld [vmem:[%s1483_s1 + $0xb0] sm:$0xff]  ;;  %v233_v37 = vld [vmem:[%s1483_s1 + $0xb8] sm:$0xff]  ;;  %v218_v40 = vld [vmem:[%s1483_s1 + $0x40] sm:$0xff] }
  0x18   : > { %v261_v38 = vld [vmem:[%s1484_s2 + $0x98] sm:$0xff]  ;;  %v260_v39 = vld [vmem:[%s1484_s2 + $0x90] sm:$0xff]  ;;  %v234_v41 = vld [vmem:[%s1483_s1 + $0xc0] sm:$0xff] }
  0x19   : > { %959 = vmatmul.mubr.msk.f32.gmra.mxu0 %vm437_vm1, %v211_v12  ;;  %975 = vmatmul.mubr.msk.f32.gmra.mxu1 %vm437_vm1, %v227_v13  ;;  %v263_v42 = vld [vmem:[%s1484_s2 + $0xa8] sm:$0xff]  ;;  %v262_v43 = vld [vmem:[%s1484_s2 + $0xa0] sm:$0xff]  ;;  %v265_v46 = vld [vmem:[%s1484_s2 + $0xb8] sm:$0xff] }
  0x1a   : > { %615 = vmatprep.mubr.f32.mxu0 %v1049_v0  ;;  %711 = vmatprep.mubr.f32.mxu1 %v1049_v0  ;;  %v219_v44 = vld [vmem:[%s1483_s1 + $0x48] sm:$0xff]  ;;  %v264_v47 = vld [vmem:[%s1484_s2 + $0xb0] sm:$0xff]  ;;  %v266_v51 = vld [vmem:[%s1484_s2 + $0xc0] sm:$0xff] }
  0x1b   : > { %312 = vperm.xlu1 %1023, %v249_v14   ;;  %307 = vperm.xlu0 %1022, %v248_v15   ;;  %v235_v45 = vld [vmem:[%s1483_s1 + $0xc8] sm:$0xff]  ;;  %v220_v48 = vld [vmem:[%s1483_s1 + $0x50] sm:$0xff]  ;;  %v221_v52 = vld [vmem:[%s1483_s1 + $0x58] sm:$0xff] }
  0x1c   : > { %v236_v49 = vld [vmem:[%s1483_s1 + $0xd0] sm:$0xff]  ;;  %v267_v50 = vld [vmem:[%s1484_s2 + $0xc8] sm:$0xff]  ;;  %v237_v53 = vld [vmem:[%s1483_s1 + $0xd8] sm:$0xff] }
  0x1d   : > { %960 = vmatmul.mubr.msk.f32.gmra.mxu0 %vm437_vm1, %v212_v16  ;;  %976 = vmatmul.mubr.msk.f32.gmra.mxu1 %vm437_vm1, %v228_v17  ;;  %v269_v54 = vld [vmem:[%s1484_s2 + $0xd8] sm:$0xff]  ;;  %v268_v55 = vld [vmem:[%s1484_s2 + $0xd0] sm:$0xff]  ;;  %v222_v56 = vld [vmem:[%s1483_s1 + $0x60] sm:$0xff] }
  0x1e   : > { %621 = vmatprep.mubr.f32.mxu0 %v1049_v0  ;;  %717 = vmatprep.mubr.f32.mxu1 %v1049_v0  ;;  %v238_v57 = vld [vmem:[%s1483_s1 + $0xe0] sm:$0xff]  ;;  %v271_v58 = vld [vmem:[%s1484_s2 + $0xe8] sm:$0xff]  ;;  %v273_v62 = vld [vmem:[%s1484_s2 + $0xf8] sm:$0x7f] }
  0x1f   : > { %322 = vperm.xlu1 %1023, %v251_v18   ;;  %317 = vperm.xlu0 %1022, %v250_v19   ;;  %v270_v59 = vld [vmem:[%s1484_s2 + $0xe0] sm:$0xff]  ;;  %v223_v60 = vld [vmem:[%s1483_s1 + $0x68] sm:$0xff]  ;;  %v272_v63 = vld [vmem:[%s1484_s2 + $0xf0] sm:$0xff] }
  0x20   : > { %v239_v61 = vld [vmem:[%s1483_s1 + $0xe8] sm:$0xff]  ;;  %v224_v1 = vld [vmem:[%s1483_s1 + $0x70] sm:$0xff]  ;;  %v225_v3 = vld [vmem:[%s1483_s1 + $0x78] sm:$0xff] }
  0x21   : > { %961 = vmatmul.mubr.msk.f32.gmra.mxu0 %vm437_vm1, %v213_v20  ;;  %977 = vmatmul.mubr.msk.f32.gmra.mxu1 %vm437_vm1, %v229_v21  ;;  %v240_v2 = vld [vmem:[%s1483_s1 + $0xf0] sm:$0xff]  ;;  %v241_v4 = vld [vmem:[%s1483_s1 + $0xf8] sm:$0x7f] }
  0x22   : > { %627 = vmatprep.mubr.f32.mxu0 %v1049_v0  ;;  %723 = vmatprep.mubr.f32.mxu1 %v1049_v0 }
  0x23   : > { %332 = vperm.xlu1 %1023, %v253_v22   ;;  %327 = vperm.xlu0 %1022, %v252_v23  }
  0x25   : > { %962 = vmatmul.mubr.msk.f32.gmra.mxu0 %vm437_vm1, %v214_v24  ;;  %978 = vmatmul.mubr.msk.f32.gmra.mxu1 %vm437_vm1, %v230_v25 }
  0x26   : > { %633 = vmatprep.mubr.f32.mxu0 %v1049_v0  ;;  %729 = vmatprep.mubr.f32.mxu1 %v1049_v0 }
  0x27   : > { %342 = vperm.xlu1 %1023, %v255_v26   ;;  %337 = vperm.xlu0 %1022, %v254_v27  }
  0x29   : > { %963 = vmatmul.mubr.msk.f32.gmra.mxu0 %vm437_vm1, %v215_v28  ;;  %979 = vmatmul.mubr.msk.f32.gmra.mxu1 %vm437_vm1, %v231_v29 }
  0x2a   : > { %639 = vmatprep.mubr.f32.mxu0 %v1049_v0  ;;  %735 = vmatprep.mubr.f32.mxu1 %v1049_v0 }
  0x2b   : > { %352 = vperm.xlu1 %1023, %v257_v30   ;;  %347 = vperm.xlu0 %1022, %v256_v31  }
  0x2d   : > { %964 = vmatmul.mubr.msk.f32.gmra.mxu0 %vm437_vm1, %v216_v32  ;;  %980 = vmatmul.mubr.msk.f32.gmra.mxu1 %vm437_vm1, %v232_v33 }
  0x2e   : > { %645 = vmatprep.mubr.f32.mxu0 %v1049_v0  ;;  %741 = vmatprep.mubr.f32.mxu1 %v1049_v0 }
  0x2f   : > { %362 = vperm.xlu1 %1023, %v259_v34   ;;  %357 = vperm.xlu0 %1022, %v258_v35  }
  0x31   : > { %965 = vmatmul.mubr.msk.f32.gmra.mxu0 %vm437_vm1, %v217_v36  ;;  %981 = vmatmul.mubr.msk.f32.gmra.mxu1 %vm437_vm1, %v233_v37 }
  0x32   : > { %651 = vmatprep.mubr.f32.mxu0 %v1049_v0  ;;  %747 = vmatprep.mubr.f32.mxu1 %v1049_v0 }
  0x33   : > { %372 = vperm.xlu1 %1023, %v261_v38   ;;  %367 = vperm.xlu0 %1022, %v260_v39  }
  0x35   : > { %966 = vmatmul.mubr.msk.f32.gmra.mxu0 %vm437_vm1, %v218_v40  ;;  %982 = vmatmul.mubr.msk.f32.gmra.mxu1 %vm437_vm1, %v234_v41 }
  0x36   : > { %657 = vmatprep.mubr.f32.mxu0 %v1049_v0  ;;  %753 = vmatprep.mubr.f32.mxu1 %v1049_v0 }
  0x37   : > { %382 = vperm.xlu1 %1023, %v263_v42   ;;  %377 = vperm.xlu0 %1022, %v262_v43  }
  0x39   : > { %967 = vmatmul.mubr.msk.f32.gmra.mxu0 %vm437_vm1, %v219_v44  ;;  %983 = vmatmul.mubr.msk.f32.gmra.mxu1 %vm437_vm1, %v235_v45 }
  0x3a   : > { %663 = vmatprep.mubr.f32.mxu0 %v1049_v0  ;;  %759 = vmatprep.mubr.f32.mxu1 %v1049_v0 }
  0x3b   : > { %392 = vperm.xlu1 %1023, %v265_v46   ;;  %387 = vperm.xlu0 %1022, %v264_v47  }
  0x3d   : > { %968 = vmatmul.mubr.msk.f32.gmra.mxu0 %vm437_vm1, %v220_v48  ;;  %984 = vmatmul.mubr.msk.f32.gmra.mxu1 %vm437_vm1, %v236_v49 }
  0x3e   : > { %669 = vmatprep.mubr.f32.mxu0 %v1049_v0  ;;  %765 = vmatprep.mubr.f32.mxu1 %v1049_v0 }
  0x3f   : > { %402 = vperm.xlu1 %1023, %v267_v50   ;;  %397 = vperm.xlu0 %1022, %v266_v51  }
  0x41   : > { %969 = vmatmul.mubr.msk.f32.gmra.mxu0 %vm437_vm1, %v221_v52  ;;  %985 = vmatmul.mubr.msk.f32.gmra.mxu1 %vm437_vm1, %v237_v53 }
  0x42   : > { %675 = vmatprep.mubr.f32.mxu0 %v1049_v0  ;;  %771 = vmatprep.mubr.f32.mxu1 %v1049_v0 }
  0x43   : > { %412 = vperm.xlu1 %1023, %v269_v54   ;;  %407 = vperm.xlu0 %1022, %v268_v55  }
  0x45   : > { %970 = vmatmul.mubr.msk.f32.gmra.mxu0 %vm437_vm1, %v222_v56  ;;  %986 = vmatmul.mubr.msk.f32.gmra.mxu1 %vm437_vm1, %v238_v57 }
  0x46   : > { %681 = vmatprep.mubr.f32.mxu0 %v1049_v0  ;;  %777 = vmatprep.mubr.f32.mxu1 %v1049_v0 }
  0x47   : > { %422 = vperm.xlu1 %1023, %v271_v58   ;;  %417 = vperm.xlu0 %1022, %v270_v59  }
  0x49   : > { %971 = vmatmul.mubr.msk.f32.gmra.mxu0 %vm437_vm1, %v223_v60  ;;  %987 = vmatmul.mubr.msk.f32.gmra.mxu1 %vm437_vm1, %v239_v61 }
  0x4a   : > { %687 = vmatprep.mubr.f32.mxu0 %v1049_v0  ;;  %783 = vmatprep.mubr.f32.mxu1 %v1049_v0 }
  0x4b   : > { %432 = vperm.xlu1 %1023, %v273_v62   ;;  %427 = vperm.xlu0 %1022, %v272_v63  }
  0x4d   : > { %972 = vmatmul.mubr.msk.f32.gmra.mxu0 %vm437_vm1, %v224_v1  ;;  %988 = vmatmul.mubr.msk.f32.gmra.mxu1 %vm437_vm1, %v240_v2 }
  0x4e   : > { %693 = vmatprep.mubr.f32.mxu0 %v1049_v0  ;;  %789 = vmatprep.mubr.f32.mxu1 %v1049_v0 }
  0x51   : > { %973 = vmatmul.mubr.msk.f32.gmra.mxu0 %vm437_vm1, %v225_v3  ;;  %989 = vmatmul.mubr.msk.f32.gmra.mxu1 %vm437_vm1, %v241_v4 }
  0x8a   : > { %v278_v5 = vpop.permute.xlu0 %277  ;;  %v288_v6 = vpop.permute.xlu1 %287 }
  0x8e   : > { %v283_v7 = vpop.permute.xlu0 %282  ;;  %v1351_v8 = vpop.permute.xlu1 %292 }
  0x92   : > { %v1353_v9 = vpop.permute.xlu0 %297  ;;  %v1355_v0 = vpop.permute.xlu1 %302 }
  0x96   : > { %v1357_v10 = vpop.permute.xlu0 %307  ;;  %v1359_v11 = vpop.permute.xlu1 %312 }
  0x9a   : > { %v1361_v12 = vpop.permute.xlu0 %317  ;;  %v1363_v13 = vpop.permute.xlu1 %322 }
  0x9e   : > { %v1365_v14 = vpop.permute.xlu0 %327  ;;  %v1367_v15 = vpop.permute.xlu1 %332 }
  0xa2   : > { %v1369_v16 = vpop.permute.xlu0 %337  ;;  %v1371_v17 = vpop.permute.xlu1 %342 }
  0xa6   : > { %v1373_v18 = vpop.permute.xlu0 %347  ;;  %v1375_v19 = vpop.permute.xlu1 %352 }
  0xaa   : > { %v358_v20 = vpop.permute.xlu0 %357  ;;  %v363_v27 = vpop.permute.xlu1 %362 }
  0xae   : > { %v368_v36 = vpop.permute.xlu0 %367  ;;  %v373_v45 = vpop.permute.xlu1 %372 }
  0xb2   : > { %v378_v54 = vpop.permute.xlu0 %377  ;;  %v383_v63 = vpop.permute.xlu1 %382 }
  0xd5   : > { %v605_v21 = vpop.f32.mrf.mxu0  ;;  %v701_v22 = vpop.f32.mrf.mxu1 }
  0xd6   : > { %v606_v23 = vadd.f32 %v605_v21, %v278_v5  ;;  %v702_v24 = vadd.f32 %v701_v22, %v358_v20 }
  0xd7   : > { %v607_v25 = vpop.f32.mrf.mxu0  ;;  %v703_v26 = vpop.f32.mrf.mxu1 }
  0xd8   : > { %796 = vst [vmem:[%s1381_s9] sm:$0xff] %v606_v23  ;;  %828 = vst [vmem:[%s1381_s9 + $0x100] sm:$0xff] %v702_v24  ;;  %v608_v28 = vadd.f32 %v607_v25, %v278_v5  ;;  %v704_v29 = vadd.f32 %v703_v26, %v358_v20  ;;  %v388_v20 = vpop.permute.xlu0 %387 }
  0xd9   : > { %v611_v30 = vpop.f32.mrf.mxu0  ;;  %v707_v31 = vpop.f32.mrf.mxu1 }
  0xda   : > { %797 = vst [vmem:[%s1381_s9 + $0x8] sm:$0xff] %v608_v28  ;;  %829 = vst [vmem:[%s1381_s9 + $0x108] sm:$0xff] %v704_v29  ;;  %v612_v32 = vadd.f32 %v611_v30, %v283_v7  ;;  %v708_v33 = vadd.f32 %v707_v31, %v363_v27  ;;  %v393_v28 = vpop.permute.xlu1 %392 }
  0xdb   : > { %v613_v34 = vpop.f32.mrf.mxu0  ;;  %v709_v35 = vpop.f32.mrf.mxu1 }
  0xdc   : > { %798 = vst [vmem:[%s1381_s9 + $0x10] sm:$0xff] %v612_v32  ;;  %830 = vst [vmem:[%s1381_s9 + $0x110] sm:$0xff] %v708_v33  ;;  %v614_v37 = vadd.f32 %v613_v34, %v283_v7  ;;  %v710_v38 = vadd.f32 %v709_v35, %v363_v27 }
  0xdd   : > { %v617_v39 = vpop.f32.mrf.mxu0  ;;  %v713_v40 = vpop.f32.mrf.mxu1 }
  0xde   : > { %799 = vst [vmem:[%s1381_s9 + $0x18] sm:$0xff] %v614_v37  ;;  %831 = vst [vmem:[%s1381_s9 + $0x118] sm:$0xff] %v710_v38  ;;  %v618_v41 = vadd.f32 %v617_v39, %v288_v6  ;;  %v714_v42 = vadd.f32 %v713_v40, %v368_v36 }
  0xdf   : > { %v619_v43 = vpop.f32.mrf.mxu0  ;;  %v715_v44 = vpop.f32.mrf.mxu1 }
  0xe0   : > { %800 = vst [vmem:[%s1381_s9 + $0x20] sm:$0xff] %v618_v41  ;;  %832 = vst [vmem:[%s1381_s9 + $0x120] sm:$0xff] %v714_v42  ;;  %v620_v46 = vadd.f32 %v619_v43, %v288_v6  ;;  %v716_v47 = vadd.f32 %v715_v44, %v368_v36  ;;  %v398_v36 = vpop.permute.xlu0 %397  ;;  %v403_v44 = vpop.permute.xlu1 %402 }
  0xe1   : > { %v623_v48 = vpop.f32.mrf.mxu0  ;;  %v719_v49 = vpop.f32.mrf.mxu1 }
  0xe2   : > { %801 = vst [vmem:[%s1381_s9 + $0x28] sm:$0xff] %v620_v46  ;;  %833 = vst [vmem:[%s1381_s9 + $0x128] sm:$0xff] %v716_v47  ;;  %v624_v50 = vadd.f32 %v623_v48, %v1351_v8  ;;  %v720_v51 = vadd.f32 %v719_v49, %v373_v45 }
  0xe3   : > { %v625_v52 = vpop.f32.mrf.mxu0  ;;  %v721_v53 = vpop.f32.mrf.mxu1 }
  0xe4   : > { %802 = vst [vmem:[%s1381_s9 + $0x30] sm:$0xff] %v624_v50  ;;  %834 = vst [vmem:[%s1381_s9 + $0x130] sm:$0xff] %v720_v51  ;;  %v626_v55 = vadd.f32 %v625_v52, %v1351_v8  ;;  %v722_v56 = vadd.f32 %v721_v53, %v373_v45  ;;  %v408_v52 = vpop.permute.xlu0 %407 }
  0xe5   : > { %v629_v57 = vpop.f32.mrf.mxu0  ;;  %v725_v58 = vpop.f32.mrf.mxu1 }
  0xe6   : > { %803 = vst [vmem:[%s1381_s9 + $0x38] sm:$0xff] %v626_v55  ;;  %835 = vst [vmem:[%s1381_s9 + $0x138] sm:$0xff] %v722_v56  ;;  %v630_v59 = vadd.f32 %v629_v57, %v1353_v9  ;;  %v726_v60 = vadd.f32 %v725_v58, %v378_v54 }
  0xe7   : > { %v631_v61 = vpop.f32.mrf.mxu0  ;;  %v727_v62 = vpop.f32.mrf.mxu1 }
  0xe8   : > { %804 = vst [vmem:[%s1381_s9 + $0x40] sm:$0xff] %v630_v59  ;;  %836 = vst [vmem:[%s1381_s9 + $0x140] sm:$0xff] %v726_v60  ;;  %v632_v1 = vadd.f32 %v631_v61, %v1353_v9  ;;  %v728_v2 = vadd.f32 %v727_v62, %v378_v54  ;;  %v413_v60 = vpop.permute.xlu1 %412 }
  0xe9   : > { %v635_v3 = vpop.f32.mrf.mxu0  ;;  %v731_v4 = vpop.f32.mrf.mxu1 }
  0xea   : > { %805 = vst [vmem:[%s1381_s9 + $0x48] sm:$0xff] %v632_v1  ;;  %837 = vst [vmem:[%s1381_s9 + $0x148] sm:$0xff] %v728_v2  ;;  %v636_v5 = vadd.f32 %v635_v3, %v1355_v0  ;;  %v732_v6 = vadd.f32 %v731_v4, %v383_v63 }
  0xeb   : > { %v637_v7 = vpop.f32.mrf.mxu0  ;;  %v733_v8 = vpop.f32.mrf.mxu1 }
  0xec   : > { %806 = vst [vmem:[%s1381_s9 + $0x50] sm:$0xff] %v636_v5  ;;  %838 = vst [vmem:[%s1381_s9 + $0x150] sm:$0xff] %v732_v6  ;;  %v638_v21 = vadd.f32 %v637_v7, %v1355_v0  ;;  %v734_v9 = vadd.f32 %v733_v8, %v383_v63  ;;  %v418_v5 = vpop.permute.xlu0 %417 }
  0xed   : > { %v641_v22 = vpop.f32.mrf.mxu0  ;;  %v737_v23 = vpop.f32.mrf.mxu1 }
  0xee   : > { %807 = vst [vmem:[%s1381_s9 + $0x58] sm:$0xff] %v638_v21  ;;  %839 = vst [vmem:[%s1381_s9 + $0x158] sm:$0xff] %v734_v9  ;;  %v642_v24 = vadd.f32 %v641_v22, %v1357_v10  ;;  %v738_v25 = vadd.f32 %v737_v23, %v388_v20  ;;  %v423_v23 = vpop.permute.xlu1 %422 }
  0xef   : > { %v643_v26 = vpop.f32.mrf.mxu0  ;;  %v739_v27 = vpop.f32.mrf.mxu1 }
  0xf0   : > { %808 = vst [vmem:[%s1381_s9 + $0x60] sm:$0xff] %v642_v24  ;;  %840 = vst [vmem:[%s1381_s9 + $0x160] sm:$0xff] %v738_v25  ;;  %v644_v29 = vadd.f32 %v643_v26, %v1357_v10  ;;  %v740_v0 = vadd.f32 %v739_v27, %v388_v20 }
  0xf1   : > { %v647_v30 = vpop.f32.mrf.mxu0  ;;  %v743_v31 = vpop.f32.mrf.mxu1 }
  0xf2   : > { %809 = vst [vmem:[%s1381_s9 + $0x68] sm:$0xff] %v644_v29  ;;  %841 = vst [vmem:[%s1381_s9 + $0x168] sm:$0xff] %v740_v0  ;;  %v648_v32 = vadd.f32 %v647_v30, %v1359_v11  ;;  %v744_v33 = vadd.f32 %v743_v31, %v393_v28  ;;  %v428_v30 = vpop.permute.xlu0 %427 }
  0xf3   : > { %v649_v34 = vpop.f32.mrf.mxu0  ;;  %v745_v35 = vpop.f32.mrf.mxu1 }
  0xf4   : > { %810 = vst [vmem:[%s1381_s9 + $0x70] sm:$0xff] %v648_v32  ;;  %842 = vst [vmem:[%s1381_s9 + $0x170] sm:$0xff] %v744_v33  ;;  %v650_v37 = vadd.f32 %v649_v34, %v1359_v11  ;;  %v746_v10 = vadd.f32 %v745_v35, %v393_v28 }
  0xf5   : > { %v653_v38 = vpop.f32.mrf.mxu0  ;;  %v749_v39 = vpop.f32.mrf.mxu1 }
  0xf6   : > { %811 = vst [vmem:[%s1381_s9 + $0x78] sm:$0xff] %v650_v37  ;;  %843 = vst [vmem:[%s1381_s9 + $0x178] sm:$0xff] %v746_v10  ;;  %v654_v40 = vadd.f32 %v653_v38, %v1361_v12  ;;  %v750_v41 = vadd.f32 %v749_v39, %v398_v36  ;;  %v433_v10 = vpop.permute.xlu1 %432 }
  0xf7   : > { %v655_v42 = vpop.f32.mrf.mxu0  ;;  %v751_v43 = vpop.f32.mrf.mxu1 }
  0xf8   : > { %812 = vst [vmem:[%s1381_s9 + $0x80] sm:$0xff] %v654_v40  ;;  %844 = vst [vmem:[%s1381_s9 + $0x180] sm:$0xff] %v750_v41  ;;  %v656_v45 = vadd.f32 %v655_v42, %v1361_v12  ;;  %v752_v11 = vadd.f32 %v751_v43, %v398_v36 }
  0xf9   : > { %v659_v46 = vpop.f32.mrf.mxu0  ;;  %v755_v47 = vpop.f32.mrf.mxu1 }
  0xfa   : > { %813 = vst [vmem:[%s1381_s9 + $0x88] sm:$0xff] %v656_v45  ;;  %845 = vst [vmem:[%s1381_s9 + $0x188] sm:$0xff] %v752_v11  ;;  %v660_v48 = vadd.f32 %v659_v46, %v1363_v13  ;;  %v756_v49 = vadd.f32 %v755_v47, %v403_v44 }
  0xfb   : > { %v661_v50 = vpop.f32.mrf.mxu0  ;;  %v757_v51 = vpop.f32.mrf.mxu1 }
  0xfc   : > { %814 = vst [vmem:[%s1381_s9 + $0x90] sm:$0xff] %v660_v48  ;;  %846 = vst [vmem:[%s1381_s9 + $0x190] sm:$0xff] %v756_v49  ;;  %v662_v53 = vadd.f32 %v661_v50, %v1363_v13  ;;  %v758_v12 = vadd.f32 %v757_v51, %v403_v44 }
  0xfd   : > { %v665_v54 = vpop.f32.mrf.mxu0  ;;  %v761_v55 = vpop.f32.mrf.mxu1 }
  0xfe   : > { %815 = vst [vmem:[%s1381_s9 + $0x98] sm:$0xff] %v662_v53  ;;  %847 = vst [vmem:[%s1381_s9 + $0x198] sm:$0xff] %v758_v12  ;;  %v666_v56 = vadd.f32 %v665_v54, %v1365_v14  ;;  %v762_v57 = vadd.f32 %v761_v55, %v408_v52 }
  0xff   : > { %v667_v58 = vpop.f32.mrf.mxu0  ;;  %v763_v59 = vpop.f32.mrf.mxu1 }
 0x100   : > { %816 = vst [vmem:[%s1381_s9 + $0xa0] sm:$0xff] %v666_v56  ;;  %848 = vst [vmem:[%s1381_s9 + $0x1a0] sm:$0xff] %v762_v57  ;;  %v668_v61 = vadd.f32 %v667_v58, %v1365_v14  ;;  %v764_v13 = vadd.f32 %v763_v59, %v408_v52 }
 0x101   : > { %v671_v62 = vpop.f32.mrf.mxu0  ;;  %v767_v63 = vpop.f32.mrf.mxu1 }
 0x102   : > { %817 = vst [vmem:[%s1381_s9 + $0xa8] sm:$0xff] %v668_v61  ;;  %849 = vst [vmem:[%s1381_s9 + $0x1a8] sm:$0xff] %v764_v13  ;;  %v672_v1 = vadd.f32 %v671_v62, %v1367_v15  ;;  %v768_v2 = vadd.f32 %v767_v63, %v413_v60 }
 0x103   : > { %v673_v3 = vpop.f32.mrf.mxu0  ;;  %v769_v4 = vpop.f32.mrf.mxu1 }
 0x104   : > { %818 = vst [vmem:[%s1381_s9 + $0xb0] sm:$0xff] %v672_v1  ;;  %850 = vst [vmem:[%s1381_s9 + $0x1b0] sm:$0xff] %v768_v2  ;;  %v674_v6 = vadd.f32 %v673_v3, %v1367_v15  ;;  %v770_v14 = vadd.f32 %v769_v4, %v413_v60 }
 0x105   : > { %v677_v7 = vpop.f32.mrf.mxu0  ;;  %v773_v8 = vpop.f32.mrf.mxu1 }
 0x106   : > { %819 = vst [vmem:[%s1381_s9 + $0xb8] sm:$0xff] %v674_v6  ;;  %851 = vst [vmem:[%s1381_s9 + $0x1b8] sm:$0xff] %v770_v14  ;;  %v678_v20 = vadd.f32 %v677_v7, %v1369_v16  ;;  %v774_v21 = vadd.f32 %v773_v8, %v418_v5 }
 0x107   : > { %v679_v9 = vpop.f32.mrf.mxu0  ;;  %v775_v22 = vpop.f32.mrf.mxu1 }
 0x108   : > { %820 = vst [vmem:[%s1381_s9 + $0xc0] sm:$0xff] %v678_v20  ;;  %852 = vst [vmem:[%s1381_s9 + $0x1c0] sm:$0xff] %v774_v21  ;;  %v680_v24 = vadd.f32 %v679_v9, %v1369_v16  ;;  %v776_v15 = vadd.f32 %v775_v22, %v418_v5 }
 0x109   : > { %v683_v25 = vpop.f32.mrf.mxu0  ;;  %v779_v26 = vpop.f32.mrf.mxu1 }
 0x10a   : > { %821 = vst [vmem:[%s1381_s9 + $0xc8] sm:$0xff] %v680_v24  ;;  %853 = vst [vmem:[%s1381_s9 + $0x1c8] sm:$0xff] %v776_v15  ;;  %v684_v27 = vadd.f32 %v683_v25, %v1371_v17  ;;  %v780_v28 = vadd.f32 %v779_v26, %v423_v23 }
 0x10b   : > { %v685_v29 = vpop.f32.mrf.mxu0  ;;  %v781_v0 = vpop.f32.mrf.mxu1 }
 0x10c   : > { %822 = vst [vmem:[%s1381_s9 + $0xd0] sm:$0xff] %v684_v27  ;;  %854 = vst [vmem:[%s1381_s9 + $0x1d0] sm:$0xff] %v780_v28  ;;  %v686_v31 = vadd.f32 %v685_v29, %v1371_v17  ;;  %v782_v16 = vadd.f32 %v781_v0, %v423_v23 }
 0x10d   : > { %v689_v32 = vpop.f32.mrf.mxu0  ;;  %v785_v33 = vpop.f32.mrf.mxu1 }
 0x10e   : > { %823 = vst [vmem:[%s1381_s9 + $0xd8] sm:$0xff] %v686_v31  ;;  %855 = vst [vmem:[%s1381_s9 + $0x1d8] sm:$0xff] %v782_v16  ;;  %v690_v34 = vadd.f32 %v689_v32, %v1373_v18  ;;  %v786_v35 = vadd.f32 %v785_v33, %v428_v30 }
 0x10f   : > { %v691_v36 = vpop.f32.mrf.mxu0  ;;  %v787_v37 = vpop.f32.mrf.mxu1 }
 0x110   : > { %824 = vst [vmem:[%s1381_s9 + $0xe0] sm:$0xff] %v690_v34  ;;  %856 = vst [vmem:[%s1381_s9 + $0x1e0] sm:$0xff] %v786_v35  ;;  %v692_v17 = vadd.f32 %v691_v36, %v1373_v18  ;;  %v788_v38 = vadd.f32 %v787_v37, %v428_v30 }
 0x111   : > { %v695_v39 = vpop.f32.mrf.mxu0  ;;  %v791_v40 = vpop.f32.mrf.mxu1 }
 0x112   : > { %825 = vst [vmem:[%s1381_s9 + $0xe8] sm:$0xff] %v692_v17  ;;  %857 = vst [vmem:[%s1381_s9 + $0x1e8] sm:$0xff] %v788_v38  ;;  %v696_v41 = vadd.f32 %v695_v39, %v1375_v19  ;;  %v792_v42 = vadd.f32 %v791_v40, %v433_v10 }
 0x113   : > { %v697_v43 = vpop.f32.mrf.mxu0  ;;  %v793_v44 = vpop.f32.mrf.mxu1 }
 0x114   : > { %826 = vst [vmem:[%s1381_s9 + $0xf0] sm:$0xff] %v696_v41  ;;  %858 = vst [vmem:[%s1381_s9 + $0x1f0] sm:$0x7f] %v792_v42  ;;  %v698_v45 = vadd.f32 %v697_v43, %v1375_v19  ;;  %v794_v11 = vadd.f32 %v793_v44, %v433_v10 }
 0x116   : > { %827 = vst [vmem:[%s1381_s9 + $0xf8] sm:$0xff] %v698_v45  ;;  %859 = vst [vmem:[%s1381_s9 + $0x1f8] sm:$0x7f] %v794_v11 }
 0x117 PF: > { %s13_s14 = sadd.s32 1, %s1047_s14   ;;  %s1486_s12 = smov %s1043_s13 }
 0x118   : > { %p10_p5 = scmp.ge.s32.totalorder %s13_s14, 4   ;;  %s1487_s13 = smov %s1489_s15 }
 0x11a   :  { %12 = sbr.rel (!%p10_p5) target bundleno = 2 (0x2), region = 62 }

</bundles_post_ra>
